<compile_context>
chip_gen: v5e
topology: v5e:2x2
jax: 0.10.0
libtpu: 0.0.40
codegen_flags: <defaults>
</compile_context>

<pallas_src>
import functools

import jax
import jax.numpy as jnp
from jax.experimental import pallas as pl
from jax.experimental.pallas import tpu as pltpu


def _se_scale_and_fold(x_sum_col, inv_hw, w1, b1, w2t, b2, wft):
    """x_sum_col: (C, 1) f32 spatial sum. Returns the folded bf16 (F, C) weight."""
    y = x_sum_col * inv_hw                                         # (C, 1) mean
    # squeeze: h[r] = relu(sum_c w1[c, r] * y[c] + b1[r])   (sublane reduce)
    h = jnp.sum(w1 * y, axis=0, keepdims=True) + b1                # (1, Cr)
    h = jnp.maximum(h, 0.0)
    # excite: s[c] = sigmoid(sum_r w2t[c, r] * h[r] + b2[c]) (lane reduce)
    s = jnp.sum(w2t * h, axis=1, keepdims=True) + b2               # (C, 1)
    s = jax.nn.sigmoid(s)
    # fold the per-channel scale into the tiny (F, C) fusion weight (F*C elems)
    return (wft.astype(jnp.float32) * jnp.transpose(s)).astype(jnp.bfloat16)


def _paf_fused_kernel(x_ref, w1_ref, b1_ref, w2t_ref, b2_ref, wft_ref, bf_ref,
                      o_ref, *, inv_hw):
    # Single pass: whole (C, HW) image per grid step (x read from HBM once).
    x = x_ref[0]                                                   # (C, HW) bf16
    x_sum = jnp.sum(x, axis=1, keepdims=True, dtype=jnp.float32)   # f32 accumulate
    w_fold = _se_scale_and_fold(x_sum, inv_hw, w1_ref[...], b1_ref[...],
                                w2t_ref[...], b2_ref[...], wft_ref[...])
    out = jnp.dot(w_fold, x, preferred_element_type=jnp.float32)   # (F, HW)
    o_ref[0] = (out + bf_ref[...]).astype(o_ref.dtype)


def _pool_se_fold_kernel(x_ref, w1_ref, b1_ref, w2t_ref, b2_ref, wft_ref,
                         wfold_ref, acc_ref, *, inv_hw):
    # Pass 1 of the tiled schedule: accumulate the spatial sum over HW tiles,
    # then (on the last tile) run the SE MLP and emit the folded (F, C) weight.
    k = pl.program_id(1)

    @pl.when(k == 0)
    def _():
        acc_ref[...] = jnp.zeros_like(acc_ref)

    acc_ref[...] += jnp.sum(x_ref[0], axis=1, keepdims=True, dtype=jnp.float32)

    @pl.when(k == pl.num_programs(1) - 1)
    def _():
        wfold_ref[0] = _se_scale_and_fold(
            acc_ref[...], inv_hw, w1_ref[...], b1_ref[...],
            w2t_ref[...], b2_ref[...], wft_ref[...])


def _fuse_matmul_kernel(x_ref, wfold_ref, bf_ref, o_ref):
    # Pass 2 of the tiled schedule: out(F, T) = w_fold(F, C) @ x(C, T) + b.
    out = jnp.dot(wfold_ref[0], x_ref[0], preferred_element_type=jnp.float32)
    o_ref[0] = (out + bf_ref[...]).astype(o_ref.dtype)


def _pick_hw_tile(hw, max_lanes):
    """Largest multiple of 128 <= max_lanes that divides hw (else whole hw)."""
    if hw <= max_lanes:
        return hw
    t = (max_lanes // 128) * 128
    while t >= 128:
        if hw % t == 0:
            return t
        t -= 128
    return hw   # TODO(synk): ragged HW would need masked pooling


def paf_pallas(x_nchw, w1, b1, w2, b2, wf, bf, *,
               out_dtype=jnp.float32, max_hw_tile=4096, force_tiled=False):
    """x_nchw: (N,C,H,W) f32 (or tuple/list concatenated on channels).
    w1:(C,Cr) b1:(Cr,) w2:(Cr,C) b2:(C,) wf:(C,F) bf:(F,).
    Returns (N, F, H, W) in out_dtype."""
    if isinstance(x_nchw, (tuple, list)):
        x_nchw = jnp.concatenate(x_nchw, axis=1)

    N, C, H, W = x_nchw.shape
    HW = H * W
    Cr = w1.shape[1]
    F = wf.shape[1]
    out_isize = jnp.dtype(out_dtype).itemsize

    # Native NCHW: pure reshape (no transpose); bf16 halves HBM->VMEM traffic
    # and is the MXU-native dtype (all accumulation stays f32 in-kernel).
    x = x_nchw.reshape(N, C, HW).astype(jnp.bfloat16)

    # Weight layouts chosen so no large in-kernel transposes are needed:
    #   w1  : (C, Cr)  C on sublanes, matches pooled (C, 1)
    #   w2t : (C, Cr)  transpose of the 2nd SE conv, C on sublanes
    #   wft : (F, C)   transposed fusion conv -> lane-dense (F, HW/T) output
    w2t = jnp.transpose(w2)
    wft = jnp.transpose(wf).astype(jnp.bfloat16)
    b1_2d = b1.reshape(1, Cr)
    b2_2d = b2.reshape(C, 1)
    bf_2d = bf.reshape(F, 1)

    weight_bytes = 4 * (w1.size + w2.size + b1.size + b2.size + bf.size) + 2 * wf.size

    # ---------------- fused single-pass path (image fits VMEM) ----------------
    fused_vmem = 2 * (C * HW * 2) + 2 * (F * HW * out_isize) + weight_bytes
    if (not force_tiled) and fused_vmem <= 24 * 1024 * 1024:
        cost = pl.CostEstimate(
            flops=int(2 * N * F * C * HW + 2 * N * C * HW),
            transcendentals=int(N * C),
            bytes_accessed=int(x.size * 2 + N * F * HW * out_isize + weight_bytes))
        out = pl.pallas_call(
            functools.partial(_paf_fused_kernel, inv_hw=1.0 / HW),
            out_shape=jax.ShapeDtypeStruct((N, F, HW), out_dtype),
            grid=(N,),
            in_specs=[
                pl.BlockSpec((1, C, HW), lambda n: (n, 0, 0)),   # x: one image / step
                pl.BlockSpec((C, Cr), lambda n: (0, 0)),         # w1   (resident)
                pl.BlockSpec((1, Cr), lambda n: (0, 0)),         # b1
                pl.BlockSpec((C, Cr), lambda n: (0, 0)),         # w2^T
                pl.BlockSpec((C, 1), lambda n: (0, 0)),          # b2
                pl.BlockSpec((F, C), lambda n: (0, 0)),          # wf^T (bf16)
                pl.BlockSpec((F, 1), lambda n: (0, 0)),          # bf
            ],
            out_specs=pl.BlockSpec((1, F, HW), lambda n: (n, 0, 0)),
            compiler_params=pltpu.CompilerParams(
                dimension_semantics=("parallel",),
                vmem_limit_bytes=32 * 1024 * 1024),   # raise v5e's 16 MiB default
            cost_estimate=cost,
        )(x, w1, b1_2d, w2t, b2_2d, wft, bf_2d)
        return out.reshape(N, F, H, W)

    # ---------------- tiled two-pass path (large images / v7x VMEM) -----------
    T = _pick_hw_tile(HW, max_hw_tile)
    K = HW // T

    # Pass 1: pooled means + SE MLP + fold the scale into the (F, C) weight.
    wfold = pl.pallas_call(
        functools.partial(_pool_se_fold_kernel, inv_hw=1.0 / HW),
        out_shape=jax.ShapeDtypeStruct((N, F, C), jnp.bfloat16),
        grid=(N, K),
        in_specs=[
            pl.BlockSpec((1, C, T), lambda n, k: (n, 0, k)),
            pl.BlockSpec((C, Cr), lambda n, k: (0, 0)),
            pl.BlockSpec((1, Cr), lambda n, k: (0, 0)),
            pl.BlockSpec((C, Cr), lambda n, k: (0, 0)),
            pl.BlockSpec((C, 1), lambda n, k: (0, 0)),
            pl.BlockSpec((F, C), lambda n, k: (0, 0)),
        ],
        out_specs=pl.BlockSpec((1, F, C), lambda n, k: (n, 0, 0)),
        scratch_shapes=[pltpu.VMEM((C, 1), jnp.float32)],
        compiler_params=pltpu.CompilerParams(
            dimension_semantics=("parallel", "arbitrary")),
        cost_estimate=pl.CostEstimate(
            flops=int(2 * N * C * HW), transcendentals=int(N * C),
            bytes_accessed=int(x.size * 2 + N * F * C * 2 + weight_bytes)),
    )(x, w1, b1_2d, w2t, b2_2d, wft)

    # Pass 2: fully-parallel tiled matmul, lane-dense (F, T) stores.
    cost2 = pl.CostEstimate(
        flops=int(2 * N * F * C * HW), transcendentals=0,
        bytes_accessed=int(x.size * 2 + N * F * HW * out_isize + N * F * C * 2))
    out = pl.pallas_call(
        _fuse_matmul_kernel,
        out_shape=jax.ShapeDtypeStruct((N, F, HW), out_dtype),
        grid=(N, K),
        in_specs=[
            pl.BlockSpec((1, C, T), lambda n, k: (n, 0, k)),
            pl.BlockSpec((1, F, C), lambda n, k: (n, 0, 0)),
            pl.BlockSpec((F, 1), lambda n, k: (0, 0)),
        ],
        out_specs=pl.BlockSpec((1, F, T), lambda n, k: (n, 0, k)),
        compiler_params=pltpu.CompilerParams(
            dimension_semantics=("parallel", "parallel")),
        cost_estimate=cost2,
    )(x, wfold, bf_2d)
    return out.reshape(N, F, H, W)


def paf_reference(x_nchw, w1, b1, w2, b2, wf, bf):
    """Pure-JAX f32 reference matching the PyTorch forward."""
    y = jnp.mean(x_nchw, axis=(2, 3))                       # (N, C)
    h = jnp.maximum(y @ w1 + b1, 0.0)
    s = jax.nn.sigmoid(h @ w2 + b2)                         # (N, C)
    xs = x_nchw * s[:, :, None, None]
    out = jnp.einsum("nchw,cf->nfhw", xs, wf) + bf[None, :, None, None]
    return out


def init_params(key, channel, n_feats, reduction=16):
    """Deterministic init mirroring Conv2d default (uniform +/- 1/sqrt(fan_in))."""
    Cr = channel // reduction
    ks = jax.random.split(key, 6)

    def u(k, shape, fan_in):
        bound = 1.0 / (fan_in ** 0.5)
        return jax.random.uniform(k, shape, jnp.float32, -bound, bound)

    # 1x1 conv weights stored as (C_in, C_out) matmul matrices.
    w1 = u(ks[0], (channel, Cr), channel)
    b1 = u(ks[1], (Cr,), channel)
    w2 = u(ks[2], (Cr, channel), Cr)
    b2 = u(ks[3], (channel,), Cr)
    wf = u(ks[4], (channel, n_feats), channel)
    bf = u(ks[5], (n_feats,), channel)
    return w1, b1, w2, b2, wf, bf


if __name__ == "__main__":
    N, C, H, W = 2, 32, 16, 16           # channel=32, reduction=16 -> hidden=2
    n_feats = 16

    key = jax.random.PRNGKey(0)
    kx, kp = jax.random.split(key)
    x = jax.random.normal(kx, (N, C, H, W), jnp.float32)
    params = init_params(kp, C, n_feats, reduction=16)

    ref = paf_reference(x, *params)

    # Fused single-pass path (small image fits VMEM; x read from HBM once).
    out_fused = jax.block_until_ready(paf_pallas(x, *params))
    assert out_fused.shape == (N, n_feats, H, W)
    # bf16 activations/weights with f32 accumulation: loosened tolerance.
    assert jnp.allclose(out_fused, ref, atol=3e-2, rtol=3e-2), "fused mismatch"

    # Tiled two-pass path (the schedule used for large images / v7x VMEM).
    out_tiled = jax.block_until_ready(
        paf_pallas(x, *params, force_tiled=True, max_hw_tile=128))
    assert out_tiled.shape == (N, n_feats, H, W)
    assert jnp.allclose(out_tiled, ref, atol=3e-2, rtol=3e-2), "tiled mismatch"

    print("KERNEL_OK")
</pallas_src>

<mosaic_0001>
module attributes {stable_mosaic.version = 11 : i64} {
  func.func @_paf_fused_kernel(%arg0: i32, %arg1: memref<1x32x256xbf16, #tpu.memory_space<vmem>>, %arg2: memref<32x2xf32, #tpu.memory_space<vmem>>, %arg3: memref<1x2xf32, #tpu.memory_space<vmem>>, %arg4: memref<32x2xf32, #tpu.memory_space<vmem>>, %arg5: memref<32x1xf32, #tpu.memory_space<vmem>>, %arg6: memref<16x32xbf16, #tpu.memory_space<vmem>>, %arg7: memref<16x1xf32, #tpu.memory_space<vmem>>, %arg8: memref<1x16x256xf32, #tpu.memory_space<vmem>>) attributes {dimension_semantics = [#tpu.dimension_semantics<parallel>], iteration_bounds = array<i64: 2>, scalar_prefetch = 0 : i64, scratch_operands = 0 : i64, tpu.core_type = #tpu.core_type<tc>, window_params = [{transform_indices = @transform_0, window_bounds = array<i64: 1, 32, 256>}, {pipeline_mode = #tpu.pipeline_mode<synchronous>, transform_indices = @transform_1, window_bounds = array<i64: 32, 2>}, {pipeline_mode = #tpu.pipeline_mode<synchronous>, transform_indices = @transform_2, window_bounds = array<i64: 1, 2>}, {pipeline_mode = #tpu.pipeline_mode<synchronous>, transform_indices = @transform_3, window_bounds = array<i64: 32, 2>}, {pipeline_mode = #tpu.pipeline_mode<synchronous>, transform_indices = @transform_4, window_bounds = array<i64: 32, 1>}, {pipeline_mode = #tpu.pipeline_mode<synchronous>, transform_indices = @transform_5, window_bounds = array<i64: 16, 32>}, {pipeline_mode = #tpu.pipeline_mode<synchronous>, transform_indices = @transform_6, window_bounds = array<i64: 16, 1>}, {transform_indices = @transform_7, window_bounds = array<i64: 1, 16, 256>}]} {
    %c0 = arith.constant 0 : index
    %c0_0 = arith.constant 0 : index
    %c0_1 = arith.constant 0 : index
    %0 = vector.load %arg1[%c0, %c0_0, %c0_1] : memref<1x32x256xbf16, #tpu.memory_space<vmem>>, vector<1x32x256xbf16>
    %1 = vector.shape_cast %0 : vector<1x32x256xbf16> to vector<32x256xbf16>
    %2 = arith.extf %1 : vector<32x256xbf16> to vector<32x256xf32>
    %cst = arith.constant dense<0.000000e+00> : vector<32xf32>
    %3 = vector.multi_reduction <add>, %2, %cst [1] : vector<32x256xf32> to vector<32xf32>
    %4 = vector.shape_cast %3 : vector<32xf32> to vector<32x1xf32>
    %c0_2 = arith.constant 0 : index
    %c0_3 = arith.constant 0 : index
    %5 = vector.load %arg2[%c0_2, %c0_3] : memref<32x2xf32, #tpu.memory_space<vmem>>, vector<32x2xf32>
    %c0_4 = arith.constant 0 : index
    %c0_5 = arith.constant 0 : index
    %6 = vector.load %arg3[%c0_4, %c0_5] : memref<1x2xf32, #tpu.memory_space<vmem>>, vector<1x2xf32>
    %c0_6 = arith.constant 0 : index
    %c0_7 = arith.constant 0 : index
    %7 = vector.load %arg4[%c0_6, %c0_7] : memref<32x2xf32, #tpu.memory_space<vmem>>, vector<32x2xf32>
    %c0_8 = arith.constant 0 : index
    %c0_9 = arith.constant 0 : index
    %8 = vector.load %arg5[%c0_8, %c0_9] : memref<32x1xf32, #tpu.memory_space<vmem>>, vector<32x1xf32>
    %c0_10 = arith.constant 0 : index
    %c0_11 = arith.constant 0 : index
    %9 = vector.load %arg6[%c0_10, %c0_11] : memref<16x32xbf16, #tpu.memory_space<vmem>>, vector<16x32xbf16>
    %cst_12 = arith.constant 3.906250e-03 : f32
    %10 = vector.broadcast %cst_12 : f32 to vector<32x1xf32>
    %11 = arith.mulf %4, %10 : vector<32x1xf32>
    %12 = vector.broadcast %11 : vector<32x1xf32> to vector<32x2xf32>
    %13 = arith.mulf %5, %12 : vector<32x2xf32>
    %cst_13 = arith.constant dense<0.000000e+00> : vector<2xf32>
    %14 = vector.multi_reduction <add>, %13, %cst_13 [0] : vector<32x2xf32> to vector<2xf32>
    %15 = vector.shape_cast %14 : vector<2xf32> to vector<1x2xf32>
    %16 = arith.addf %15, %6 : vector<1x2xf32>
    %cst_14 = arith.constant 0.000000e+00 : f32
    %17 = vector.broadcast %cst_14 : f32 to vector<1x2xf32>
    %18 = arith.maximumf %16, %17 : vector<1x2xf32>
    %19 = vector.broadcast %18 : vector<1x2xf32> to vector<32x2xf32>
    %20 = arith.mulf %7, %19 : vector<32x2xf32>
    %cst_15 = arith.constant dense<0.000000e+00> : vector<32xf32>
    %21 = vector.multi_reduction <add>, %20, %cst_15 [1] : vector<32x2xf32> to vector<32xf32>
    %22 = vector.shape_cast %21 : vector<32xf32> to vector<32x1xf32>
    %23 = arith.addf %22, %8 : vector<32x1xf32>
    %24 = arith.negf %23 : vector<32x1xf32>
    %25 = math.exp %24 : vector<32x1xf32>
    %cst_16 = arith.constant 1.000000e+00 : f32
    %26 = vector.broadcast %cst_16 : f32 to vector<32x1xf32>
    %27 = arith.addf %26, %25 : vector<32x1xf32>
    %28 = arith.divf %26, %27 : vector<32x1xf32>
    %29 = arith.extf %9 : vector<16x32xbf16> to vector<16x32xf32>
    %30 = tpu.transpose %28, [1, 0] : vector<32x1xf32> -> vector<1x32xf32>
    %31 = vector.broadcast %30 : vector<1x32xf32> to vector<16x32xf32>
    %32 = arith.mulf %29, %31 : vector<16x32xf32>
    %33 = arith.truncf %32 : vector<16x32xf32> to vector<16x32xbf16>
    %cst_17 = arith.constant dense<0.000000e+00> : vector<16x256xf32>
    %34 = tpu.matmul %33, %1, %cst_17 {dimension_numbers = #tpu.dot_dimension_numbers<[1], [0], [0], [1], [0, 0, 1, 1], [], []>} : vector<16x32xbf16>, vector<32x256xbf16>, vector<16x256xf32> -> vector<16x256xf32>
    %c0_18 = arith.constant 0 : index
    %c0_19 = arith.constant 0 : index
    %35 = vector.load %arg7[%c0_18, %c0_19] : memref<16x1xf32, #tpu.memory_space<vmem>>, vector<16x1xf32>
    %36 = vector.broadcast %35 : vector<16x1xf32> to vector<16x256xf32>
    %37 = arith.addf %34, %36 : vector<16x256xf32>
    %c0_20 = arith.constant 0 : index
    %c0_21 = arith.constant 0 : index
    %c0_22 = arith.constant 0 : index
    %38 = vector.load %arg8[%c0_20, %c0_21, %c0_22] : memref<1x16x256xf32, #tpu.memory_space<vmem>>, vector<1x16x256xf32>
    %39 = vector.shape_cast %38 : vector<1x16x256xf32> to vector<16x256xf32>
    %40 = vector.shape_cast %37 : vector<16x256xf32> to vector<1x16x256xf32>
    tpu.vector_store %arg8[%c0_20, %c0_21, %c0_22], %40 {strides = array<i32>} : memref<1x16x256xf32, #tpu.memory_space<vmem>>, vector<1x16x256xf32>,
    return
  }
  func.func @transform_0(%arg0: i32) -> (i32, i32, i32) {
    %c0_i32 = arith.constant 0 : i32
    %c0_i32_0 = arith.constant 0 : i32
    %c0_i32_1 = arith.constant 0 : i32
    return %arg0, %c0_i32, %c0_i32_0 : i32, i32, i32
  }
  func.func @transform_1(%arg0: i32) -> (i32, i32) {
    %c0_i32 = arith.constant 0 : i32
    %c0_i32_0 = arith.constant 0 : i32
    %c0_i32_1 = arith.constant 0 : i32
    return %c0_i32, %c0_i32_0 : i32, i32
  }
  func.func @transform_2(%arg0: i32) -> (i32, i32) {
    %c0_i32 = arith.constant 0 : i32
    %c0_i32_0 = arith.constant 0 : i32
    %c0_i32_1 = arith.constant 0 : i32
    return %c0_i32, %c0_i32_0 : i32, i32
  }
  func.func @transform_3(%arg0: i32) -> (i32, i32) {
    %c0_i32 = arith.constant 0 : i32
    %c0_i32_0 = arith.constant 0 : i32
    %c0_i32_1 = arith.constant 0 : i32
    return %c0_i32, %c0_i32_0 : i32, i32
  }
  func.func @transform_4(%arg0: i32) -> (i32, i32) {
    %c0_i32 = arith.constant 0 : i32
    %c0_i32_0 = arith.constant 0 : i32
    %c0_i32_1 = arith.constant 0 : i32
    return %c0_i32, %c0_i32_0 : i32, i32
  }
  func.func @transform_5(%arg0: i32) -> (i32, i32) {
    %c0_i32 = arith.constant 0 : i32
    %c0_i32_0 = arith.constant 0 : i32
    %c0_i32_1 = arith.constant 0 : i32
    return %c0_i32, %c0_i32_0 : i32, i32
  }
  func.func @transform_6(%arg0: i32) -> (i32, i32) {
    %c0_i32 = arith.constant 0 : i32
    %c0_i32_0 = arith.constant 0 : i32
    %c0_i32_1 = arith.constant 0 : i32
    return %c0_i32, %c0_i32_0 : i32, i32
  }
  func.func @transform_7(%arg0: i32) -> (i32, i32, i32) {
    %c0_i32 = arith.constant 0 : i32
    %c0_i32_0 = arith.constant 0 : i32
    %c0_i32_1 = arith.constant 0 : i32
    return %arg0, %c0_i32, %c0_i32_0 : i32, i32, i32
  }
}

</mosaic_0001>

<bundles_post_ra>
// kernel: tpu_custom_call.1
= control target key start
LH: loop header
LB: loop body
LE: loop exit
PB: predicated region body
PF: predicated region fallthrough
CT: control target
= control target key end

     0   :  { %12 = vsyncpa [#allocation3], 0  ;;  %s996_s0 = inlined_call_operand.vmem [shape: bf16[2,32,256], index: 0, kind: input, shape index: {}]   ;;  %s997_s1 = inlined_call_operand.vmem [shape: f32[32,2], index: 1, kind: input, shape index: {}]   ;;  %s998_s2 = inlined_call_operand.vmem [shape: f32[1,2], index: 2, kind: input, shape index: {}]   ;;  %s999_s3 = inlined_call_operand.vmem [shape: f32[32,2], index: 3, kind: input, shape index: {}]   ;;  %s1000_s4 = inlined_call_operand.vmem [shape: f32[32,1], index: 4, kind: input, shape index: {}]   ;;  %s1001_s5 = inlined_call_operand.vmem [shape: bf16[16,32], index: 5, kind: input, shape index: {}]   ;;  %s1002_s6 = inlined_call_operand.vmem [shape: f32[16,1], index: 6, kind: input, shape index: {}]   ;;  %s1003_s7 = inlined_call_operand.hbm [shape: f32[2,16,256], index: 7, kind: output, shape index: {}]  }
   0x1   :  { %14 = vsyncpa [#allocation3 + $0x1], 0  ;;  %s834_s24 = smov 0   ;;  %s836_s25 = smov 0  }
   0x2   :  { %s838_s26 = smov 0   ;;  %s840_s27 = smov 0  }
   0x3 LB: > { %s855_s28 = sadd.s32 4294967295, %s789_s27   ;;  %s622_s29 = sadd.s32 4294967294, %s789_s27   ;;  %s789_s27 = sphi %s840_s27, %s1009_s27   ;;  %s785_s26 = sphi %s838_s26, %s1008_s26   ;;  %s781_s25 = sphi %s836_s25, %s1007_s25   ;;  %s777_s24 = sphi %s834_s24, %s1006_s24  }
   0x4   : > { %s859_s30 = sadd.s32 1, %s789_s27   ;;  %s179_s8 = sadd.s32 1, %s785_s26 }
   0x5   : > { %s176_s9 = ssub.s32 %s789_s27, %s859_s30  ;;  %p189_p0 = scmp.ne.s32.totalorder %s785_s26, %s781_s25 }
   0x6   : > { %p177_p1 = scmp.eq.s32.totalorder %s176_s9, 0  ;;  %p190_p2 = scmp.eq.s32.totalorder %s855_s28, 1 }
   0x7   : > { %p195_p3 = scmp.ne.s32.totalorder %s781_s25, %s777_s24  ;;  %p196_p4 = scmp.eq.s32.totalorder %s622_s29, 1 }
   0x8   : > { %s870_s10 = scalar_select %p177_p1, %s785_s26, %s179_s8  }
   0x9   : > { %p872_p5 = por %p190_p2, %p189_p0  ;;  %p876_p6 = por %p196_p4, %p195_p3 }
   0xa   : > { %p625_p7 = scmp.ge.s32.totalorder %s789_s27, 1  ;;  %p240_p8 = scmp.lt.s32.totalorder %s789_s27, 3 }
   0xc   : > { %p241_p9 = pnand %p625_p7, %p240_p8 }
   0xd   : > { %p272_p10 = scmp.lt.s32.totalorder (!%p241_p9), %s855_s28, 1  ;;  %s661_s8 = sshll.u32 (!%p241_p9), %s855_s28, 5 }
   0xe   : > { %244 = sbr.rel (%p241_p9) target bundleno = 634 (0x27a), region = 48  ;;  %s556_s15 = scalar_lea.hbm (!%p241_p9), %s1003_s7, %s661_s8 }
   0xf   : > { %s559_s18 = sshll.u32 (!%p241_p9), %s556_s15, 4  ;;  %s747_s23 = scalar_lea.hbm (!%p241_p9), %s1003_s7, 64  ;;  %s560_s18 = int_to_ptr.hbm [resolvable:$true] %s559_s18 }
  0x10   : > { %s741_s19 = sshra.s32 (!%p241_p9), %s560_s18, 4  ;;  %s742_s19 = int_to_ptr.hbm [resolvable:$true] %s741_s19 }
  0x11   : > { %s743_s20 = scalar_lea.hbm (!%p241_p9), %s742_s19, 32  ;;  %p748_p0 = scmp.lt.s32.totalorder (!%p241_p9), %s742_s19, %s1003_s7 }
  0x12   : > { %p744_p11 = scmp.ne.s32.totalorder (!%p241_p9), %s742_s19, %s743_s20  ;;  %p749_p1 = scmp.lt.s32.totalorder (!%p241_p9), %s747_s23, %s743_s20 }
  0x13   : > { %s273_s13 = scalar_select %p272_p10, %s855_s28, 1  ;;  %v302_v19 = vld [vmem:[%s997_s1] sm:$0xff]  ;;  %v304_v21 = vld [vmem:[%s997_s1 + $0x10] sm:$0xff]  ;;  %v303_v22 = vld [vmem:[%s997_s1 + $0x8] sm:$0xff]  ;;  %vm325_vm0 = vcmask 15360  }
  0x14   : > { %v305_v24 = vld [vmem:[%s997_s1 + $0x18] sm:$0xff]  ;;  %v306_v44 = vld [vmem:[%s998_s2] sm:$0x1]  ;;  %v309_v49 = vld [vmem:[%s999_s3 + $0x10] sm:$0xff]  ;;  %p745_p12 = pnand %p744_p11, %p872_p5  ;;  %p750_p2 = por %p749_p1, %p748_p0 }
  0x15   : > { %s656_s14 = sshll.u32 %s273_s13, 5  ;;  %v310_v48 = vld [vmem:[%s999_s3 + $0x18] sm:$0xff]  ;;  %v307_v50 = vld [vmem:[%s999_s3] sm:$0xff]  ;;  %v308_v58 = vld [vmem:[%s999_s3 + $0x8] sm:$0xff] }
  0x16   : > { %s887_s17 = scalar_lea.vmem %s996_s0, %s656_s14  ;;  %v313_v61 = vld [vmem:[%s1000_s4 + $0x10] sm:$0xff]  ;;  %v311_v62 = vld [vmem:[%s1000_s4] sm:$0xff]  ;;  %p746_p13 = pneg %p745_p12 }
  0x17   : > { %v278_v0 = vld [vmem:[%s887_s17] sm:$0xff]  ;;  %v280_v1 = vld [vmem:[%s887_s17 + $0x10] sm:$0xff]  ;;  %v279_v6 = vld [vmem:[%s887_s17 + $0x8] sm:$0xff] }
  0x18   : > { %v282_v2 = vunpack.c.l.bf16 %v278_v0  ;;  %v283_v3 = vunpack.c.h.bf16 %v278_v0  ;;  %v286_v4 = vunpack.c.l.bf16 %v280_v1  ;;  %v287_v5 = vunpack.c.h.bf16 %v280_v1  ;;  %v281_v7 = vld [vmem:[%s887_s17 + $0x18] sm:$0xff]  ;;  %p751_p3 = pnand %p750_p2, %p746_p13 }
  0x19   : > { %v284_v10 = vunpack.c.l.bf16 %v279_v6  ;;  %v285_v11 = vunpack.c.h.bf16 %v279_v6  ;;  %v288_v12 = vunpack.c.l.bf16 %v281_v7  ;;  %v289_v13 = vunpack.c.h.bf16 %v281_v7 }
  0x1a   : > { %v290_v8 = vadd.f32 %v283_v3, %v282_v2  ;;  %v296_v9 = vadd.f32 %v287_v5, %v286_v4  ;;  %v314_v3 = vld [vmem:[%s1000_s4 + $0x18] sm:$0xff] }
  0x1b   : > { %v293_v14 = vadd.f32 %v285_v11, %v284_v10  ;;  %v299_v15 = vadd.f32 %v289_v13, %v288_v12 }
  0x1c   : > { %291 = vadd.xlane.f32.xlu0 %v290_v8  ;;  %297 = vadd.xlane.f32.xlu1 %v296_v9  ;;  %v312_v8 = vld [vmem:[%s1000_s4 + $0x8] sm:$0xff] }
  0x24   : > { %294 = vadd.xlane.f32.xlu0 %v293_v14  ;;  %300 = vadd.xlane.f32.xlu1 %v299_v15 }
  0x8f   : > { %v292_v16 = vpop.xlane.xlu0 %291  ;;  %v298_v17 = vpop.xlane.xlu1 %297 }
  0x90   : > { %v317_v18 = vmul.f32 0.00390625, %v292_v16  ;;  %v319_v20 = vmul.f32 0.00390625, %v298_v17 }
  0x92   : > { %v321_v26 = vmul.f32 %v317_v18, %v302_v19  ;;  %v323_v29 = vmul.f32 %v319_v20, %v304_v21 }
  0x94   : > { %v326_v32 = vsel %vm325_vm0, %v321_v26, 0.0  ;;  %v329_v35 = vsel %vm325_vm0, %v323_v29, 0.0  ;;  %v659_v29 = vld [vmem:[%s887_s17 + $0x14] sm:$0xf] }
  0x97   : > { %v295_v23 = vpop.xlane.xlu0 %294  ;;  %v301_v25 = vpop.xlane.xlu1 %300 }
  0x98   : > { %v318_v27 = vmul.f32 0.00390625, %v295_v23  ;;  %v320_v28 = vmul.f32 0.00390625, %v301_v25 }
  0x9a   : > { %v322_v30 = vmul.f32 %v318_v27, %v303_v22  ;;  %v324_v31 = vmul.f32 %v320_v28, %v305_v24  ;;  %v643_v27 = vld [vmem:[%s887_s17 + $0x10] sm:$0xf]  ;;  %v660_v28 = vld [vmem:[%s887_s17 + $0x14] sm:$0xf0] }
  0x9c   : > { %v327_v33 = vsel %vm325_vm0, %v322_v30, 0.0  ;;  %v331_v36 = vsel %vm325_vm0, %v324_v31, 0.0  ;;  %v644_v31 = vor.u32 %v660_v28, %v643_v27 }
  0x9d   : > { %v328_v34 = vadd.f32 %v327_v33, %v326_v32  ;;  %v645_v32 = vld [vmem:[%s887_s17 + $0x18] sm:$0xf0] }
  0x9e   : > { %518 = vmatpush.bf16.msra.mxu0 %v644_v31 }
  0x9f   : > { %v330_v37 = vadd.f32 %v329_v35, %v328_v34  ;;  %v648_v34 = vor.u32 %v659_v29, %v645_v32 }
  0xa1   : > { %v332_v38 = vadd.f32 %v331_v36, %v330_v37  ;;  %532 = vmatpush.bf16.msra.mxu1 %v648_v34 }
  0xa3   : > { %v333_v39 = vrot.slane %v332_v38, 4 }
  0xa5   : > { %v334_v40 = vadd.f32 %v333_v39, %v332_v38 }
  0xa7   : > { %v335_v41 = vrot.slane %v334_v40, 2 }
  0xa9   : > { %v336_v42 = vadd.f32 %v335_v41, %v334_v40 }
  0xab   : > { %v337_v43 = vrot.slane %v336_v42, 1 }
  0xad   : > { %v338_v45 = vadd.f32 %v337_v43, %v336_v42 }
  0xaf   : > { %v339_v46 = vadd.f32 %v338_v45, %v306_v44 }
  0xb1   : > { %v340_v47 = vmax.f32 %v339_v46, 0.0 }
  0xb3   : > { %v341_v51 = vperm.slane %v340_v47, 0 }
  0xb5   : > { %v345_v52 = vmul.f32 %v341_v51, %v310_v48  ;;  %v344_v53 = vmul.f32 %v341_v51, %v309_v49  ;;  %v342_v54 = vmul.f32 %v341_v51, %v307_v50  ;;  %v343_v59 = vmul.f32 %v341_v51, %v308_v58 }
  0xb7   : > { %v355_v55 = vsel %vm325_vm0, %v345_v52, 0.0  ;;  %v352_v56 = vsel %vm325_vm0, %v344_v53, 0.0  ;;  %v346_v57 = vsel %vm325_vm0, %v342_v54, 0.0  ;;  %v349_v60 = vsel %vm325_vm0, %v343_v59, 0.0 }
  0xb8   : > { %356 = vadd.xlane.f32.xlu1 %v355_v55  ;;  %353 = vadd.xlane.f32.xlu0 %v352_v56 }
  0xb9   : > { %347 = vadd.xlane.f32.xlu2 %v346_v57 }
  0xc1   : > { %350 = vadd.xlane.f32.xlu2 %v349_v60 }
 0x12b   : > { %v354_v63 = vpop.xlane.xlu0 %353  ;;  %v357_v4 = vpop.xlane.xlu1 %356 }
 0x12c   : > { %v360_v0 = vadd.f32 %v354_v63, %v313_v61  ;;  %v348_v1 = vpop.xlane.xlu2 %347  ;;  %v361_v7 = vadd.f32 %v357_v4, %v314_v3  ;;  %v635_v3 = vld [vmem:[%s887_s17] sm:$0xf]  ;;  %v658_v4 = vld [vmem:[%s887_s17 + $0x4] sm:$0xf0] }
 0x12d   : > { %v358_v2 = vadd.f32 %v348_v1, %v311_v62 }
 0x12e   : > { %v631_v6 = vmul.f32 -1.442695, %v360_v0  ;;  %v632_v11 = vmul.f32 -1.442695, %v361_v7  ;;  %v637_v7 = vld [vmem:[%s887_s17 + $0x8] sm:$0xf0] }
 0x12f   : > { %v629_v5 = vmul.f32 -1.442695, %v358_v2 }
 0x131   : > { %711 = vpow2.f32 %v629_v5  ;;  %v657_v5 = vld [vmem:[%s887_s17 + $0x4] sm:$0xf]  ;;  %s269_s17 = sand.u32 1, %s781_s25  }
 0x132   : > { %713 = vpow2.f32 %v631_v6  ;;  %v636_v6 = vor.u32 %v658_v4, %v635_v3  ;;  %s626_s29 = sshll.u32 %s269_s17, 5  ;;  %s545_s28 = scalar_lea.sflag [#allocation3], %s269_s17 }
 0x133   : > { %715 = vpow2.f32 %v632_v11  ;;  %v791_v11 = vmov 0   ;;  %s271_s9 = scalar_lea.vmem [#allocation2], %s626_s29 }
 0x134   : > { %v351_v9 = vpop.xlane.xlu2 %350  ;;  %519 = vmatpush.bf16.msra.mxu0 %v636_v6  ;;  %709 = vset.pattern.permute.xlu0 %v791_v11  ;;  %s557_s16 = sshll.u32 %s271_s9, 4  ;;  %s558_s16 = int_to_ptr.vmem [resolvable:$true] %s557_s16 }
 0x135   : > { %v359_v10 = vadd.f32 %v351_v9, %v312_v8  ;;  %v640_v8 = vor.u32 %v657_v5, %v637_v7  ;;  %v476_v9 = vld [vmem:[%s1002_s6] sm:$0xff]  ;;  %710 = vset.pattern.permute.xlu1 %v791_v11 }
 0x136   : > { %480 = vperm.xlu0 %709, %v476_v9  }
 0x137   : > { %v712_v12 = vpop.eup %711  ;;  %v630_v13 = vmul.f32 -1.442695, %v359_v10  ;;  %533 = vmatpush.bf16.msra.mxu1 %v640_v8  ;;  %v477_v10 = vld [vmem:[%s1002_s6 + $0x8] sm:$0xff] }
 0x138   : > { %v374_v14 = vadd.f32 1.0, %v712_v12  ;;  %v714_v15 = vpop.eup %713  ;;  %485 = vperm.xlu1 %710, %v477_v10   ;;  %v663_v12 = vld [vmem:[%s1001_s5] sm:$0xff]  }
 0x139   : > { %v376_v16 = vadd.f32 1.0, %v714_v15  ;;  %v716_v17 = vpop.eup %715 }
 0x13a   : > { %717 = vrcp.f32 %v374_v14  ;;  %v940_v23 = vadd.f32 1.0, %v716_v17  ;;  %v387_v24 = vand.u32 2147483647, %v374_v14  ;;  %v389_v25 = vand.u32 2147483648, %v374_v14 }
 0x13b   : > { %719 = vpow2.f32 %v630_v13  ;;  %vm383_vm2 = vweird.f32 %v374_v14  ;;  %v419_v55 = vand.u32 2147483648, %v376_v16  ;;  %vm413_vm10 = vweird.f32 %v376_v16 }
 0x13c   : > { %721 = vrcp.f32 %v376_v16  ;;  %v390_v35 = vor.u32 1.1754944e-38, %v389_v25  ;;  %vm388_vm4 = vcmp.eq.f32.partialorder %v387_v24, 8.507059e+37  ;;  %v417_v56 = vand.u32 2147483647, %v376_v16 }
 0x13d   : > { %v420_v59 = vor.u32 1.1754944e-38, %v419_v55  ;;  %v434_v62 = vand.u32 2147483648, %v940_v23  ;;  %vm428_vm14 = vweird.f32 %v940_v23  ;;  %v432_v63 = vand.u32 2147483647, %v940_v23 }
 0x13e   : > { %vm418_vm12 = vcmp.eq.f32.partialorder %v417_v56, 8.507059e+37  ;;  %v664_v13 = vunpack.c.l.bf16 %v663_v12 }
 0x13f   : > { %v435_v1 = vor.u32 1.1754944e-38, %v434_v62  ;;  %vm433_vm0 = vcmp.eq.f32.partialorder %v432_v63, 8.507059e+37 }
 0x140   : > { %v718_v18 = vpop.eup %717 }
 0x141   : > { %v720_v19 = vpop.eup %719  ;;  %v379_v20 = vmul.f32 %v718_v18, %v374_v14  ;;  %vm384_vm1 = vweird.f32 %v718_v18  ;;  %v665_v14 = vunpack.c.h.bf16 %v663_v12 }
 0x142   : > { %v375_v21 = vadd.f32 1.0, %v720_v19  ;;  %v722_v30 = vpop.eup %721  ;;  %vm385_vm3 = vmor %vm383_vm2, %vm384_vm1  ;;  %vm508_vm1 = vcmask 261120  }
 0x143   : > { %v380_v22 = vsub.f32 1.0, %v379_v20  ;;  %v409_v37 = vmul.f32 %v722_v30, %v376_v16  ;;  %vm414_vm9 = vweird.f32 %v722_v30 }
 0x144   : > { %723 = vrcp.f32 %v375_v21  ;;  %v404_v44 = vand.u32 2147483648, %v375_v21  ;;  %v402_v46 = vand.u32 2147483647, %v375_v21  ;;  %vm398_vm6 = vweird.f32 %v375_v21  ;;  %vm415_vm11 = vmor %vm413_vm10, %vm414_vm9 }
 0x145   : > { %v381_v26 = vmul.f32 %v718_v18, %v380_v22  ;;  %725 = vrcp.f32 %v940_v23  ;;  %v410_v42 = vsub.f32 1.0, %v409_v37 }
 0x146   : > { %v405_v50 = vor.u32 1.1754944e-38, %v404_v44  ;;  %vm403_vm8 = vcmp.eq.f32.partialorder %v402_v46, 8.507059e+37 }
 0x147   : > { %v382_v33 = vadd.f32 %v718_v18, %v381_v26  ;;  %v411_v48 = vmul.f32 %v722_v30, %v410_v42 }
 0x149   : > { %v386_v36 = vsel %vm385_vm3, %v718_v18, %v382_v33  ;;  %v412_v53 = vadd.f32 %v722_v30, %v411_v48 }
 0x14a   : > { %v724_v38 = vpop.eup %723  ;;  %v391_v39 = vsel %vm388_vm4, %v390_v35, %v386_v36 }
 0x14b   : > { %440 = vxpose.xlu2.b32.start [1/4] (short) (narrow) %v391_v39, 8  ;;  %v394_v40 = vmul.f32 %v724_v38, %v375_v21  ;;  %v726_v43 = vpop.eup %725  ;;  %vm399_vm5 = vweird.f32 %v724_v38  ;;  %v416_v57 = vsel %vm415_vm11, %v722_v30, %v412_v53 }
 0x14c   : > { %v424_v49 = vmul.f32 %v726_v43, %v940_v23  ;;  %vm400_vm7 = vmor %vm398_vm6, %vm399_vm5  ;;  %v421_v60 = vsel %vm418_vm12, %v420_v59, %v416_v57  ;;  %vm429_vm13 = vweird.f32 %v726_v43 }
 0x14d   : > { %v395_v41 = vsub.f32 1.0, %v394_v40  ;;  %vm430_vm15 = vmor %vm428_vm14, %vm429_vm13 }
 0x14e   : > { %v425_v54 = vsub.f32 1.0, %v424_v49 }
 0x14f   : > { %v396_v45 = vmul.f32 %v724_v38, %v395_v41 }
 0x150   : > { %v426_v58 = vmul.f32 %v726_v43, %v425_v54 }
 0x151   : > { %v397_v47 = vadd.f32 %v724_v38, %v396_v45 }
 0x152   : > { %v427_v61 = vadd.f32 %v726_v43, %v426_v58 }
 0x153   : > { %v401_v51 = vsel %vm400_vm7, %v724_v38, %v397_v47 }
 0x154   : > { %v406_v52 = vsel %vm403_vm8, %v405_v50, %v401_v51  ;;  %v431_v0 = vsel %vm430_vm15, %v726_v43, %v427_v61 }
 0x155   : > { %441 = vxpose.xlu2.b32.cont [2/4] (short) (narrow) %v406_v52, 8  ;;  %v436_v2 = vsel %vm433_vm0, %v435_v1, %v431_v0 }
 0x15d   : > { %442 = vxpose.xlu2.b32.cont [3/4] (short) (narrow) %v421_v60, 8 }
 0x165   : > { %443 = vxpose.xlu2.b32.end [4/4] (short) (narrow) %v436_v2, 8 }
 0x1a8   : > { %v481_v20 = vpop.permute.xlu0 %480 }
 0x1aa   : > { %v486_v25 = vpop.permute.xlu1 %485 }
 0x1e6   : > { %v456_v15 = vpop.trf.xlu2 }
 0x1e7   : > { %v472_v16 = vperm.slane %v456_v15, 0 }
 0x1e9   : > { %v473_v17 = vmul.f32 %v664_v13, %v472_v16  ;;  %v474_v18 = vmul.f32 %v665_v14, %v472_v16 }
 0x1eb   : > { %v475_v19 = vpack.c.bf16 %v474_v18, %v473_v17 }
 0x1ed   : > { %649 = vmatmul.msk.bf16.vlgmr.msra.gmra.mxu0 %vm508_vm1, %v475_v19  ;;  %650 = vmatmul.msk.bf16.vlgmr.msra.gmra.mxu1 %vm508_vm1, %v475_v19 }
 0x26a   : > { %v521_v21 = vpop.f32.mrf.mxu0  ;;  %v535_v22 = vpop.f32.mrf.mxu1 }
 0x26b   : > { %v522_v23 = vadd.f32 %v521_v21, %v481_v20  ;;  %v536_v24 = vadd.f32 %v535_v22, %v481_v20 }
 0x26d   : > { %540 = vst [vmem:[%s271_s9] sm:$0xff] %v522_v23 }
 0x26e   : > { %541 = vst [vmem:[%s271_s9 + $0x8] sm:$0xff] %v536_v24 }
 0x272   : > { %v523_v26 = vpop.f32.mrf.mxu0  ;;  %v537_v27 = vpop.f32.mrf.mxu1 }
 0x273   : > { %v524_v28 = vadd.f32 %v523_v26, %v486_v25  ;;  %v538_v29 = vadd.f32 %v537_v27, %v486_v25 }
 0x275   : > { %542 = vst [vmem:[%s271_s9 + $0x10] sm:$0xff] %v524_v28 }
 0x276   : > { %543 = vst [vmem:[%s271_s9 + $0x18] sm:$0xff] %v538_v29 }
 0x277   : > { %754 = shalt.err (!%p751_p3)
}
 0x278   : > { %s792_s17 = smov 256   ;;  %s793_s9 = smov 16  }
 0x279   : > { %666 = dma.vmem_to_hbm [thread:$0]  (%p872_p5), %s558_s16, 512, %s560_s18, %s545_s28, %s792_s17, %s792_s17, %s793_s9  }
 0x27a PF: > { %p672_p4 = scmp.ge.s32.totalorder %s789_s27, 2  ;;  %s574_s13 = sand.u32 1, %s777_s24  }
 0x27b   : > { %s575_s14 = scalar_lea.sflag [#allocation3], %s574_s13 }
 0x27c   : > { %p669_p7 = pnand %p672_p4, %p876_p6 }
 0x27e   : > { %p670_p8 = pneg %p669_p7 }
 0x280   : > { %772 = dma.done.wait (%p670_p8), %s575_s14, 512  }
 0x281   : > { %774 = vsyncadd (%p670_p8), %s575_s14, 4294966784  ;;  %p17_p9 = scmp.ge.s32.totalorder %s859_s30, 4   ;;  %s1006_s24 = smov %s781_s25 }
 0x282   : > { %s1007_s25 = smov %s785_s26  ;;  %s1008_s26 = smov %s870_s10 }
 0x283   : > { %s1009_s27 = smov %s859_s30  ;;  %19 = sbr.rel (!%p17_p9) target bundleno = 3 (0x3), region = 83 }
 0x288   :  { %581 = vsyncpa [#allocation3], 1 }
 0x289   :  { %583 = vsyncpa [#allocation3 + $0x1], 1 }

</bundles_post_ra>
